<compile_context>
chip_gen: v7x
topology: tpu7x:2x2x1
jax: 0.10.0
libtpu: 0.0.40
codegen_flags: <defaults>
</compile_context>

<pallas_src>
import functools

import jax
import jax.numpy as jnp
from jax import lax
from jax.experimental import pallas as pl
from jax.experimental.pallas import tpu as pltpu


def _round_up(a, b):
    return -(-a // b) * b


def _transition_kernel(x_ref, w_ref, shift_ref, o_ref, *, H, W, trows, wo_p, cin, cout_p):
    # x_ref:     [1, 2*trows*wo_p, 2*cin]  bf16  rows = (input row, output col), lanes = (dj, ci)
    # w_ref:     [cin, cout_p]             bf16  conv1x1 weight with BN scale folded in
    # shift_ref: [1, cout_p]               f32   beta - mean * gamma / sqrt(var + eps)
    # o_ref:     [1, trows, wo_p, cout_p]  bf16  pooled NHWC output tile (lane-dense)
    rrows = 2 * trows
    i = pl.program_id(1)

    xf = x_ref[0]                       # (rrows*wo_p, 2*cin)
    x_l = xf[:, :cin]                   # even input columns (dj = 0)
    x_r = xf[:, cin:]                   # odd  input columns (dj = 1)

    w = w_ref[...]
    shift = shift_ref[...]

    # conv1x1 (+ folded BN scale) + shift + ReLU, one MXU pass per column parity
    y_l = jnp.maximum(jnp.dot(x_l, w, preferred_element_type=jnp.float32) + shift, 0.0)
    y_r = jnp.maximum(jnp.dot(x_r, w, preferred_element_type=jnp.float32) + shift, 0.0)
    y_l = y_l.reshape(rrows, wo_p, cout_p)          # split is tile-aligned (wo_p % 8 == 0)
    y_r = y_r.reshape(rrows, wo_p, cout_p)

    # ceil-mode avg-pool weights (validity mask * 1/count) built in-register: no HBM traffic.
    r_idx = lax.broadcasted_iota(jnp.int32, (rrows, wo_p, 1), 0)   # local input row
    c_idx = lax.broadcasted_iota(jnp.int32, (rrows, wo_p, 1), 1)   # output column
    h = i * rrows + r_idx                                          # global input row
    h_even = h - jnp.bitwise_and(r_idx, 1)                         # first row of the pool cell
    w_even = 2 * c_idx                                             # first col of the pool cell
    inv_r = jnp.where(h_even + 1 < H, 0.5, 1.0)                    # 1 / (#valid rows in cell)
    inv_c = jnp.where(w_even + 1 < W, 0.5, 1.0)                    # 1 / (#valid cols in cell)
    inv = inv_r * inv_c
    row_ok = h < H
    pw_l = jnp.where(row_ok & (w_even < W), inv, 0.0)
    pw_r = jnp.where(row_ok & (w_even + 1 < W), inv, 0.0)

    yc = y_l * pw_l + y_r * pw_r                    # column-pair (dj) reduction
    y4 = yc.reshape(trows, 2, wo_p, cout_p)         # splits only the outer (row) dim
    out = y4[:, 0] + y4[:, 1]                       # row-pair (di) reduction
    o_ref[0] = out.astype(o_ref.dtype)


def transition_forward_nhwc(x_nhwc, w_cin_cout, gamma, beta, running_mean, running_var,
                            eps=1e-5):
    """avg_pool2d(relu(BN(conv1x1(x))), 2, ceil_mode=True) on NHWC input.

    Returns NHWC bf16.  Inference mode (running BN stats, no dropout).
    """
    N, H, W, Cin = x_nhwc.shape
    Cout = w_cin_cout.shape[1]
    Ho, Wo = -(-H // 2), -(-W // 2)

    wo_p = _round_up(Wo, 8)                 # padded output width (sublane-aligned)
    cout_p = _round_up(Cout, 128)           # lane-dense output channels

    # output-row tile: target ~512 MXU rows per step, then cap by a per-step VMEM budget
    trows = max(1, min(Ho, max(1, 512 // (2 * wo_p))))
    lane_x = _round_up(2 * Cin, 128)
    per_trow = (2 * wo_p * lane_x * 2            # x slab (bf16, lane-padded in VMEM)
                + wo_p * cout_p * 2              # output slab (bf16)
                + 4 * 2 * wo_p * cout_p * 4)     # f32 intermediates
    while trows > 1 and trows * per_trow > (8 << 20):
        trows = max(1, trows // 2)
    ho_p = _round_up(Ho, trows)
    hp, wp = 2 * ho_p, 2 * wo_p
    rrows = 2 * trows

    # single cast/pad pass (disappears if the producer already emits padded NHWC bf16)
    x_pad = jnp.pad(x_nhwc.astype(jnp.bfloat16),
                    ((0, 0), (0, hp - H), (0, wp - W), (0, 0)))
    x_flat = x_pad.reshape(N, hp * wo_p, 2 * Cin)   # free (row-major) metadata reshape

    # fold BN running stats: scale into the bf16 weight, shift kept as one small f32 vector
    inv_std = 1.0 / jnp.sqrt(running_var.astype(jnp.float32) + eps)
    scale = gamma.astype(jnp.float32) * inv_std
    shift = beta.astype(jnp.float32) - running_mean.astype(jnp.float32) * scale
    w_fold = jnp.pad((w_cin_cout.astype(jnp.float32) * scale[None, :]).astype(jnp.bfloat16),
                     ((0, 0), (0, cout_p - Cout)))
    shift = jnp.pad(shift, (0, cout_p - Cout)).reshape(1, cout_p)

    grid = (N, ho_p // trows)
    kernel = functools.partial(_transition_kernel, H=H, W=W, trows=trows,
                               wo_p=wo_p, cin=Cin, cout_p=cout_p)

    blk_bytes = trows * per_trow + Cin * cout_p * 2 + cout_p * 4
    vmem_limit = int(min(max(4 * blk_bytes + (2 << 20), 32 << 20), 48 << 20))  # v7x-safe

    flops = 2 * N * hp * wp * Cin * cout_p
    bytes_accessed = (N * hp * wp * Cin * 2            # x read exactly once
                      + Cin * cout_p * 2 + cout_p * 4  # resident weight + shift
                      + N * ho_p * wo_p * cout_p * 2)  # bf16 output write
    cost = pl.CostEstimate(flops=int(flops), transcendentals=0,
                           bytes_accessed=int(bytes_accessed))

    out = pl.pallas_call(
        kernel,
        out_shape=jax.ShapeDtypeStruct((N, ho_p, wo_p, cout_p), jnp.bfloat16),
        grid=grid,
        in_specs=[
            pl.BlockSpec((1, rrows * wo_p, 2 * Cin), lambda n, i: (n, i, 0)),
            pl.BlockSpec((Cin, cout_p), lambda n, i: (0, 0)),     # resident weight
            pl.BlockSpec((1, cout_p), lambda n, i: (0, 0)),       # resident shift
        ],
        out_specs=pl.BlockSpec((1, trows, wo_p, cout_p), lambda n, i: (n, i, 0, 0)),
        compiler_params=pltpu.CompilerParams(
            dimension_semantics=("parallel", "parallel"),
            vmem_limit_bytes=vmem_limit),
        cost_estimate=cost,
    )(x_flat, w_fold, shift)

    return out[:, :Ho, :Wo, :Cout]


@jax.jit
def transition_forward(x_nchw, w_cin_cout, gamma, beta, running_mean, running_var,
                       use_dropout=False, eps=1e-5):
    """NCHW f32 -> NCHW f32 adapter matching the PyTorch module interface."""
    del use_dropout   # TODO(synk): dropout (p=0.2, training mode) not applied — eval identity.
    out_nhwc = transition_forward_nhwc(
        jnp.transpose(x_nchw, (0, 2, 3, 1)), w_cin_cout, gamma, beta,
        running_mean, running_var, eps=eps)
    return jnp.transpose(out_nhwc, (0, 3, 1, 2)).astype(jnp.float32)


def _reference(x_nchw, w_cin_cout, gamma, beta, mean, var, eps=1e-5):
    """Plain-JAX reference matching PyTorch eval-mode semantics (f32 math)."""
    x = jnp.transpose(x_nchw, (0, 2, 3, 1)).astype(jnp.float32)
    y = jnp.einsum('nhwc,co->nhwo', x, w_cin_cout.astype(jnp.float32))  # conv1x1, no bias
    y = (y - mean) / jnp.sqrt(var + eps) * gamma + beta                 # BN (running stats)
    y = jnp.maximum(y, 0.0)                                             # ReLU
    N, H, W, C = y.shape
    Ho, Wo = -(-H // 2), -(-W // 2)
    yp = jnp.pad(y, ((0, 0), (0, 2 * Ho - H), (0, 2 * Wo - W), (0, 0)))
    s = yp.reshape(N, Ho, 2, Wo, 2, C).sum(axis=(2, 4))
    hcnt = jnp.minimum(jnp.arange(Ho) * 2 + 2, H) - jnp.arange(Ho) * 2
    wcnt = jnp.minimum(jnp.arange(Wo) * 2 + 2, W) - jnp.arange(Wo) * 2
    cnt = (hcnt[:, None] * wcnt[None, :]).astype(jnp.float32)[None, :, :, None]
    return jnp.transpose(s / cnt, (0, 3, 1, 2))


if __name__ == "__main__":
    key = jax.random.PRNGKey(0)
    k1, k2, k3, k4, k5, k6 = jax.random.split(key, 6)

    N, Cin, H, W = 2, 4, 16, 16
    Cout = 8

    x = jax.random.normal(k1, (N, Cin, H, W), jnp.float32)
    # conv1x1 weight stored channels-last: [Cin, Cout]  (PyTorch stores [Cout, Cin, 1, 1])
    w = jax.random.normal(k2, (Cin, Cout), jnp.float32) * 0.2
    gamma = 1.0 + 0.1 * jax.random.normal(k3, (Cout,), jnp.float32)
    beta = 0.1 * jax.random.normal(k4, (Cout,), jnp.float32)
    running_mean = 0.1 * jax.random.normal(k5, (Cout,), jnp.float32)
    running_var = jnp.abs(jax.random.normal(k6, (Cout,), jnp.float32)) + 0.5

    out = transition_forward(x, w, gamma, beta, running_mean, running_var,
                             use_dropout=True)
    out = jax.block_until_ready(out)

    # reference with bf16-rounded inputs (kernel feeds the MXU bf16, writes bf16 output)
    x_bf = x.astype(jnp.bfloat16).astype(jnp.float32)
    w_bf = w.astype(jnp.bfloat16).astype(jnp.float32)
    ref = _reference(x_bf, w_bf, gamma, beta, running_mean, running_var)
    assert out.shape == (N, Cout, (H + 1) // 2, (W + 1) // 2), out.shape
    assert jnp.allclose(out, ref, atol=2.5e-2, rtol=2.5e-2), float(jnp.abs(out - ref).max())

    # second case with odd spatial dims: exercises the ceil_mode mask / divisor path
    H2, W2 = 15, 9
    x2 = jax.random.normal(k1, (N, Cin, H2, W2), jnp.float32)
    out2 = jax.block_until_ready(
        transition_forward(x2, w, gamma, beta, running_mean, running_var))
    ref2 = _reference(x2.astype(jnp.bfloat16).astype(jnp.float32), w_bf,
                      gamma, beta, running_mean, running_var)
    assert out2.shape == (N, Cout, (H2 + 1) // 2, (W2 + 1) // 2), out2.shape
    assert jnp.allclose(out2, ref2, atol=2.5e-2, rtol=2.5e-2), float(jnp.abs(out2 - ref2).max())

    print("KERNEL_OK")
</pallas_src>

<mosaic_0001>
module attributes {stable_mosaic.version = 11 : i64} {
  func.func @_transition_kernel(%arg0: i32, %arg1: i32, %arg2: memref<1x128x8xbf16, #tpu.memory_space<vmem>>, %arg3: memref<4x128xbf16, #tpu.memory_space<vmem>>, %arg4: memref<1x128xf32, #tpu.memory_space<vmem>>, %arg5: memref<1x8x8x128xbf16, #tpu.memory_space<vmem>>) attributes {dimension_semantics = [#tpu.dimension_semantics<parallel>, #tpu.dimension_semantics<parallel>], iteration_bounds = array<i64: 2, 1>, scalar_prefetch = 0 : i64, scratch_operands = 0 : i64, tpu.core_type = #tpu.core_type<tc>, window_params = [{transform_indices = @transform_0, window_bounds = array<i64: 1, 128, 8>}, {pipeline_mode = #tpu.pipeline_mode<synchronous>, transform_indices = @transform_1, window_bounds = array<i64: 4, 128>}, {pipeline_mode = #tpu.pipeline_mode<synchronous>, transform_indices = @transform_2, window_bounds = array<i64: 1, 128>}, {transform_indices = @transform_3, window_bounds = array<i64: 1, 8, 8, 128>}]} {
    %c0 = arith.constant 0 : index
    %c0_0 = arith.constant 0 : index
    %c0_1 = arith.constant 0 : index
    %0 = vector.load %arg2[%c0, %c0_0, %c0_1] : memref<1x128x8xbf16, #tpu.memory_space<vmem>>, vector<1x128x8xbf16>
    %1 = vector.shape_cast %0 : vector<1x128x8xbf16> to vector<128x8xbf16>
    %2 = vector.extract_strided_slice %1 {offsets = [0, 0], sizes = [128, 4], strides = [1, 1]} : vector<128x8xbf16> to vector<128x4xbf16>
    %3 = vector.extract_strided_slice %1 {offsets = [0, 4], sizes = [128, 4], strides = [1, 1]} : vector<128x8xbf16> to vector<128x4xbf16>
    %c0_2 = arith.constant 0 : index
    %c0_3 = arith.constant 0 : index
    %4 = vector.load %arg3[%c0_2, %c0_3] : memref<4x128xbf16, #tpu.memory_space<vmem>>, vector<4x128xbf16>
    %c0_4 = arith.constant 0 : index
    %c0_5 = arith.constant 0 : index
    %5 = vector.load %arg4[%c0_4, %c0_5] : memref<1x128xf32, #tpu.memory_space<vmem>>, vector<1x128xf32>
    %cst = arith.constant dense<0.000000e+00> : vector<128x128xf32>
    %6 = tpu.matmul %2, %4, %cst {dimension_numbers = #tpu.dot_dimension_numbers<[1], [0], [0], [1], [0, 0, 1, 1], [], []>} : vector<128x4xbf16>, vector<4x128xbf16>, vector<128x128xf32> -> vector<128x128xf32>
    %7 = vector.broadcast %5 : vector<1x128xf32> to vector<128x128xf32>
    %8 = arith.addf %6, %7 : vector<128x128xf32>
    %cst_6 = arith.constant 0.000000e+00 : f32
    %9 = vector.broadcast %cst_6 : f32 to vector<128x128xf32>
    %10 = arith.maximumf %8, %9 : vector<128x128xf32>
    %cst_7 = arith.constant dense<0.000000e+00> : vector<128x128xf32>
    %11 = tpu.matmul %3, %4, %cst_7 {dimension_numbers = #tpu.dot_dimension_numbers<[1], [0], [0], [1], [0, 0, 1, 1], [], []>} : vector<128x4xbf16>, vector<4x128xbf16>, vector<128x128xf32> -> vector<128x128xf32>
    %12 = vector.broadcast %5 : vector<1x128xf32> to vector<128x128xf32>
    %13 = arith.addf %11, %12 : vector<128x128xf32>
    %cst_8 = arith.constant 0.000000e+00 : f32
    %14 = vector.broadcast %cst_8 : f32 to vector<128x128xf32>
    %15 = arith.maximumf %13, %14 : vector<128x128xf32>
    %16 = vector.shape_cast %10 : vector<128x128xf32> to vector<16x8x128xf32>
    %17 = vector.shape_cast %15 : vector<128x128xf32> to vector<16x8x128xf32>
    %18 = tpu.iota {dimensions = array<i32: 0>} : vector<16x8x1xi32>
    %19 = tpu.iota {dimensions = array<i32: 1>} : vector<16x8x1xi32>
    %c16_i32 = arith.constant 16 : i32
    %20 = arith.muli %arg1, %c16_i32 : i32
    %21 = vector.broadcast %20 : i32 to vector<16x8x1xi32>
    %22 = arith.addi %21, %18 : vector<16x8x1xi32>
    %c1_i32 = arith.constant 1 : i32
    %23 = vector.broadcast %c1_i32 : i32 to vector<16x8x1xi32>
    %24 = arith.andi %18, %23 : vector<16x8x1xi32>
    %25 = arith.subi %22, %24 : vector<16x8x1xi32>
    %c2_i32 = arith.constant 2 : i32
    %26 = vector.broadcast %c2_i32 : i32 to vector<16x8x1xi32>
    %27 = arith.muli %26, %19 : vector<16x8x1xi32>
    %c1_i32_9 = arith.constant 1 : i32
    %28 = vector.broadcast %c1_i32_9 : i32 to vector<16x8x1xi32>
    %29 = arith.addi %25, %28 : vector<16x8x1xi32>
    %c16_i32_10 = arith.constant 16 : i32
    %30 = vector.broadcast %c16_i32_10 : i32 to vector<16x8x1xi32>
    %31 = arith.cmpi slt, %29, %30 : vector<16x8x1xi32>
    %cst_11 = arith.constant 5.000000e-01 : f32
    %cst_12 = arith.constant 1.000000e+00 : f32
    %32 = vector.broadcast %cst_11 : f32 to vector<16x8x1xf32>
    %33 = vector.broadcast %cst_12 : f32 to vector<16x8x1xf32>
    %34 = arith.select %31, %32, %33 : vector<16x8x1xi1>, vector<16x8x1xf32>
    %c1_i32_13 = arith.constant 1 : i32
    %35 = vector.broadcast %c1_i32_13 : i32 to vector<16x8x1xi32>
    %36 = arith.addi %27, %35 : vector<16x8x1xi32>
    %c16_i32_14 = arith.constant 16 : i32
    %37 = vector.broadcast %c16_i32_14 : i32 to vector<16x8x1xi32>
    %38 = arith.cmpi slt, %36, %37 : vector<16x8x1xi32>
    %cst_15 = arith.constant 5.000000e-01 : f32
    %cst_16 = arith.constant 1.000000e+00 : f32
    %39 = vector.broadcast %cst_15 : f32 to vector<16x8x1xf32>
    %40 = vector.broadcast %cst_16 : f32 to vector<16x8x1xf32>
    %41 = arith.select %38, %39, %40 : vector<16x8x1xi1>, vector<16x8x1xf32>
    %42 = arith.mulf %34, %41 : vector<16x8x1xf32>
    %c16_i32_17 = arith.constant 16 : i32
    %43 = vector.broadcast %c16_i32_17 : i32 to vector<16x8x1xi32>
    %44 = arith.cmpi slt, %22, %43 : vector<16x8x1xi32>
    %c16_i32_18 = arith.constant 16 : i32
    %45 = vector.broadcast %c16_i32_18 : i32 to vector<16x8x1xi32>
    %46 = arith.cmpi slt, %27, %45 : vector<16x8x1xi32>
    %47 = arith.andi %44, %46 : vector<16x8x1xi1>
    %cst_19 = arith.constant 0.000000e+00 : f32
    %48 = vector.broadcast %cst_19 : f32 to vector<16x8x1xf32>
    %49 = arith.select %47, %42, %48 : vector<16x8x1xi1>, vector<16x8x1xf32>
    %c1_i32_20 = arith.constant 1 : i32
    %50 = vector.broadcast %c1_i32_20 : i32 to vector<16x8x1xi32>
    %51 = arith.addi %27, %50 : vector<16x8x1xi32>
    %c16_i32_21 = arith.constant 16 : i32
    %52 = vector.broadcast %c16_i32_21 : i32 to vector<16x8x1xi32>
    %53 = arith.cmpi slt, %51, %52 : vector<16x8x1xi32>
    %54 = arith.andi %44, %53 : vector<16x8x1xi1>
    %cst_22 = arith.constant 0.000000e+00 : f32
    %55 = vector.broadcast %cst_22 : f32 to vector<16x8x1xf32>
    %56 = arith.select %54, %42, %55 : vector<16x8x1xi1>, vector<16x8x1xf32>
    %57 = vector.broadcast %49 : vector<16x8x1xf32> to vector<16x8x128xf32>
    %58 = arith.mulf %16, %57 : vector<16x8x128xf32>
    %59 = vector.broadcast %56 : vector<16x8x1xf32> to vector<16x8x128xf32>
    %60 = arith.mulf %17, %59 : vector<16x8x128xf32>
    %61 = arith.addf %58, %60 : vector<16x8x128xf32>
    %62 = vector.shape_cast %61 : vector<16x8x128xf32> to vector<8x2x8x128xf32>
    %63 = vector.extract_strided_slice %62 {offsets = [0, 0, 0, 0], sizes = [8, 1, 8, 128], strides = [1, 1, 1, 1]} : vector<8x2x8x128xf32> to vector<8x1x8x128xf32>
    %64 = vector.shape_cast %63 : vector<8x1x8x128xf32> to vector<8x8x128xf32>
    %65 = vector.extract_strided_slice %62 {offsets = [0, 1, 0, 0], sizes = [8, 1, 8, 128], strides = [1, 1, 1, 1]} : vector<8x2x8x128xf32> to vector<8x1x8x128xf32>
    %66 = vector.shape_cast %65 : vector<8x1x8x128xf32> to vector<8x8x128xf32>
    %67 = arith.addf %64, %66 : vector<8x8x128xf32>
    %68 = arith.truncf %67 : vector<8x8x128xf32> to vector<8x8x128xbf16>
    %c0_23 = arith.constant 0 : index
    %c0_24 = arith.constant 0 : index
    %c0_25 = arith.constant 0 : index
    %c0_26 = arith.constant 0 : index
    %69 = vector.load %arg5[%c0_23, %c0_24, %c0_25, %c0_26] : memref<1x8x8x128xbf16, #tpu.memory_space<vmem>>, vector<1x8x8x128xbf16>
    %70 = vector.shape_cast %69 : vector<1x8x8x128xbf16> to vector<8x8x128xbf16>
    %71 = vector.shape_cast %68 : vector<8x8x128xbf16> to vector<1x8x8x128xbf16>
    tpu.vector_store %arg5[%c0_23, %c0_24, %c0_25, %c0_26], %71 {strides = array<i32>} : memref<1x8x8x128xbf16, #tpu.memory_space<vmem>>, vector<1x8x8x128xbf16>,
    return
  }
  func.func @transform_0(%arg0: i32, %arg1: i32) -> (i32, i32, i32) {
    %c0_i32 = arith.constant 0 : i32
    %c0_i32_0 = arith.constant 0 : i32
    return %arg0, %arg1, %c0_i32 : i32, i32, i32
  }
  func.func @transform_1(%arg0: i32, %arg1: i32) -> (i32, i32) {
    %c0_i32 = arith.constant 0 : i32
    %c0_i32_0 = arith.constant 0 : i32
    %c0_i32_1 = arith.constant 0 : i32
    return %c0_i32, %c0_i32_0 : i32, i32
  }
  func.func @transform_2(%arg0: i32, %arg1: i32) -> (i32, i32) {
    %c0_i32 = arith.constant 0 : i32
    %c0_i32_0 = arith.constant 0 : i32
    %c0_i32_1 = arith.constant 0 : i32
    return %c0_i32, %c0_i32_0 : i32, i32
  }
  func.func @transform_3(%arg0: i32, %arg1: i32) -> (i32, i32, i32, i32) {
    %c0_i32 = arith.constant 0 : i32
    %c0_i32_0 = arith.constant 0 : i32
    %c0_i32_1 = arith.constant 0 : i32
    return %arg0, %arg1, %c0_i32, %c0_i32_0 : i32, i32, i32, i32
  }
}

</mosaic_0001>

<bundles_post_ra>
// kernel: transition_forward.1
= control target key start
LH: loop header
LB: loop body
LE: loop exit
PB: predicated region body
PF: predicated region fallthrough
CT: control target
= control target key end

     0   :  { %s1074_s12 = smov 0   ;;  %s1076_s13 = smov 0   ;;  %s1232_s0 = inlined_call_operand.vmem [shape: bf16[2,128,8], index: 0, kind: input, shape index: {}]   ;;  %s1233_s1 = inlined_call_operand.vmem [shape: bf16[4,128], index: 1, kind: input, shape index: {}]   ;;  %s1234_s2 = inlined_call_operand.vmem [shape: f32[1,128], index: 2, kind: input, shape index: {}]   ;;  %s1235_s3 = inlined_call_operand.vmem [shape: bf16[2,8,8,128], index: 3, kind: output, shape index: {}]  }
   0x1   :  { %s1078_s14 = smov 0  }
   0x2 LB: > { %s25_s15 = sadd.s32 1, %s1046_s13  ;;  %p881_p0 = scmp.ge.s32.totalorder %s1050_s14, 1  ;;  %s1050_s14 = sphi %s1078_s14, %s13_s14   ;;  %s1046_s13 = sphi %s1076_s13, %s1237_s13   ;;  %s1042_s12 = sphi %s1074_s12, %s1236_s12  }
   0x3   : > { %p27_p1 = scmp.ge.s32.totalorder %s25_s15, 2  ;;  %p158_p2 = scmp.lt.s32.totalorder %s1050_s14, 3 }
   0x5   : > { %s1239_s15 = smov (%p27_p1, %s25_s15), 0  ;;  %p159_p3 = pnand %p881_p0, %p158_p2 }
   0x6   : > { %p191_p4 = scmp.lt.s32.totalorder (!%p159_p3), %s1042_s12, 1  ;;  %v227_v0 = vld [vmem:[%s1233_s1] sm:$0x3] (!%p159_p3)  ;;  %vm300_vm0 = vcmask (!%p159_p3), 1041408   ;;  %vm275_vm1 = vcmask (!%p159_p3), 31744   ;;  %s1052_s22 = smov (!%p159_p3), 124   ;;  %v570_v34 = vlaneseq (!%p159_p3) }
   0x7   : > { %162 = sbr.rel (%p159_p3) target bundleno = 389 (0x185), region = 32  ;;  %992 = vmatprep.subr.msk.bf16.mxu0 (!%p159_p3), %vm300_vm0, %v227_v0  ;;  %v302_v1 = vsel (!%p159_p3), %vm300_vm0, %v227_v0, 0  ;;  %993 = vmatprep.subr.msk.bf16.mxu1 (!%p159_p3), %vm300_vm0, %v227_v0  ;;  %v1134_v38 = vld [vmem:[%s1234_s2] ss:$0 sm:$0xff] (!%p159_p3)  ;;  %v1053_v39 = vmov (!%p159_p3), 1.0  }
   0x8   : > { %957 = vmatpush3.bf16.msra.mxu0 (!%p159_p3), %v302_v1  ;;  %975 = vmatpush3.bf16.msra.mxu1 (!%p159_p3), %v302_v1  ;;  %v571_v35 = vshrl.u32 (!%p159_p3), %v570_v34, 7 }
   0xa   : > { %v589_v36 = vmul.u32 (!%p159_p3), 2, %v571_v35 }
   0xc   : > { %v627_v37 = vadd.s32 (!%p159_p3), 1, %v589_v36  ;;  %vm653_vm3 = vcmp.lt.s32.totalorder (!%p159_p3), %v589_v36, 16 }
   0xe   : > { %s1241_s12 = smov (!%p191_p4, %s1042_s12), 1  ;;  %vm628_vm2 = vcmp.lt.s32.totalorder %v627_v37, 16 }
   0xf   : > { %s913_s18 = sshll.u32 %s1241_s12, 6  ;;  %v629_v40 = vsel %vm628_vm2, 0.5, %v1053_v39  ;;  %s914_s25 = sshll.u32 %s1241_s12, 5 }
  0x10   : > { %s198_s21 = scalar_lea.vmem %s1232_s0, %s913_s18  ;;  %v630_v42 = vmul.f32 0.5, %v629_v40  ;;  %s1175_s28 = scalar_lea.vmem %s1235_s3, %s914_s25 }
  0x11   : > { %v1020_v2 = vld [vmem:[%s198_s21] sm:$0xff]   ;;  %v1021_v3 = vld [vmem:[%s198_s21 + $0x8] sm:$0xff]   ;;  %v1022_v4 = vld [vmem:[%s198_s21 + $0x10] sm:$0xff]  }
  0x12   : > { %417 = vrot.lane.b32.xlu0 %v1020_v2, %s1052_s22  ;;  %958 = vmatprep.mubr.msk.bf16.mxu0 %vm275_vm1, %v1020_v2  ;;  %v1023_v5 = vld [vmem:[%s198_s21 + $0x18] sm:$0xff]   ;;  %v1024_v6 = vld [vmem:[%s198_s21 + $0x20] sm:$0xff]   ;;  %v1025_v7 = vld [vmem:[%s198_s21 + $0x28] sm:$0xff]   ;;  %v1139_v45 = vsel %vm653_vm3, %v630_v42, 0.0  ;;  %v1147_v54 = vsel %vm628_vm2, %v630_v42, 0.0 }
  0x13   : > { %959 = vmatmul.mubr.msk.bf16.vlgmr.msra.gmra.mrb[0].mxu0 %vm275_vm1, %v1021_v3  ;;  %421 = vrot.lane.b32.xlu1 %v1022_v4, %s1052_s22  ;;  %v1026_v8 = vld [vmem:[%s198_s21 + $0x30] sm:$0xff]   ;;  %v1027_v9 = vld [vmem:[%s198_s21 + $0x38] sm:$0xff]  }
  0x14   : > { %962 = vmatprep.mubr.msk.bf16.mxu0 %vm275_vm1, %v1022_v4 }
  0x16   : > { %419 = vrot.lane.b32.xlu0 %v1021_v3, %s1052_s22 }
  0x17   : > { %423 = vrot.lane.b32.xlu1 %v1023_v5, %s1052_s22 }
  0x1a   : > { %425 = vrot.lane.b32.xlu0 %v1024_v6, %s1052_s22 }
  0x1b   : > { %963 = vmatmul.mubr.msk.bf16.gmra.mrb[4].mxu0 %vm275_vm1, %v1023_v5  ;;  %427 = vrot.lane.b32.xlu1 %v1025_v7, %s1052_s22 }
  0x1c   : > { %966 = vmatprep.mubr.msk.bf16.mxu0 %vm275_vm1, %v1024_v6 }
  0x1e   : > { %429 = vrot.lane.b32.xlu0 %v1026_v8, %s1052_s22 }
  0x1f   : > { %431 = vrot.lane.b32.xlu1 %v1027_v9, %s1052_s22 }
  0x23   : > { %967 = vmatmul.mubr.msk.bf16.gmra.mrb[8].mxu0 %vm275_vm1, %v1025_v7 }
  0x24   : > { %970 = vmatprep.mubr.msk.bf16.mxu0 %vm275_vm1, %v1026_v8 }
  0x2b   : > { %971 = vmatmul.mubr.msk.bf16.gmra.mrb[12].mxu0 %vm275_vm1, %v1027_v9 }
  0x84   : > { %v418_v10 = vpop.permute.xlu0 %417 }
  0x85   : > { %976 = vmatprep.mubr.msk.bf16.mxu1 %vm275_vm1, %v418_v10  ;;  %v422_v11 = vpop.permute.xlu1 %421 }
  0x88   : > { %v420_v12 = vpop.permute.xlu0 %419 }
  0x89   : > { %977 = vmatmul.mubr.msk.bf16.vlgmr.msra.gmra.mrb[0].mxu1 %vm275_vm1, %v420_v12  ;;  %v424_v13 = vpop.permute.xlu1 %423 }
  0x8a   : > { %980 = vmatprep.mubr.msk.bf16.mxu1 %vm275_vm1, %v422_v11 }
  0x8c   : > { %v426_v14 = vpop.permute.xlu0 %425 }
  0x8d   : > { %v428_v15 = vpop.permute.xlu1 %427 }
  0x90   : > { %v430_v16 = vpop.permute.xlu0 %429 }
  0x91   : > { %981 = vmatmul.mubr.msk.bf16.gmra.mrb[4].mxu1 %vm275_vm1, %v424_v13  ;;  %v432_v17 = vpop.permute.xlu1 %431 }
  0x92   : > { %984 = vmatprep.mubr.msk.bf16.mxu1 %vm275_vm1, %v426_v14 }
  0x99   : > { %985 = vmatmul.mubr.msk.bf16.gmra.mrb[8].mxu1 %vm275_vm1, %v428_v15 }
  0x9a   : > { %988 = vmatprep.mubr.msk.bf16.mxu1 %vm275_vm1, %v430_v16 }
  0xa1   : > { %989 = vmatmul.mubr.msk.bf16.gmra.mrb[12].mxu1 %vm275_vm1, %v432_v17 }
  0xe6   : > { %v960_v18 = vpop.f32.mrb[0].mxu0 }
  0xe7   : > { %v338_v19 = vpop.f32.mrb[1].mxu0  ;;  %v347_v41 = vadd.f32 %v960_v18, %v1134_v38 }
  0xe8   : > { %v961_v20 = vpop.f32.mrb[2].mxu0  ;;  %v339_v43 = vadd.f32 %v1134_v38, %v338_v19 }
  0xe9   : > { %v341_v21 = vpop.f32.mrb[3].mxu0  ;;  %v403_v44 = vmax.f32 %v347_v41, 0.0  ;;  %v350_v46 = vadd.f32 %v961_v20, %v1134_v38 }
  0xea   : > { %v401_v47 = vmax.f32 %v339_v43, 0.0  ;;  %v342_v48 = vadd.f32 %v1134_v38, %v341_v21 }
  0xeb   : > { %v720_v53 = vmul.f32 %v1139_v45, %v403_v44  ;;  %v404_v57 = vmax.f32 %v350_v46, 0.0 }
  0xec   : > { %v718_v62 = vmul.f32 %v1139_v45, %v401_v47  ;;  %v402_v63 = vmax.f32 %v342_v48, 0.0 }
  0xed   : > { %v721_v8 = vmul.f32 %v1139_v45, %v404_v57 }
  0xee   : > { %v964_v22 = vpop.f32.mrb[4].mxu0  ;;  %v719_v12 = vmul.f32 %v1139_v45, %v402_v63 }
  0xef   : > { %v354_v23 = vpop.f32.mrb[5].mxu0  ;;  %v363_v52 = vadd.f32 %v964_v22, %v1134_v38 }
  0xf0   : > { %v965_v24 = vpop.f32.mrb[6].mxu0  ;;  %v355_v61 = vadd.f32 %v1134_v38, %v354_v23 }
  0xf1   : > { %v357_v25 = vpop.f32.mrb[7].mxu0  ;;  %v407_v4 = vmax.f32 %v363_v52, 0.0  ;;  %v366_v7 = vadd.f32 %v965_v24, %v1134_v38 }
  0xf2   : > { %v405_v11 = vmax.f32 %v355_v61, 0.0  ;;  %v358_v15 = vadd.f32 %v1134_v38, %v357_v25 }
  0xf3   : > { %v724_v18 = vmul.f32 %v1139_v45, %v407_v4  ;;  %v408_v23 = vmax.f32 %v366_v7, 0.0 }
  0xf4   : > { %v722_v25 = vmul.f32 %v1139_v45, %v405_v11  ;;  %v406_v42 = vmax.f32 %v358_v15, 0.0 }
  0xf5   : > { %v725_v52 = vmul.f32 %v1139_v45, %v408_v23 }
  0xf6   : > { %v968_v26 = vpop.f32.mrb[8].mxu0 }
  0xf7   : > { %v1117_v27 = vpop.f32.mrb[9].mxu0  ;;  %v379_v21 = vadd.f32 %v968_v26, %v1134_v38 }
  0xf8   : > { %v1119_v28 = vpop.f32.mrb[10].mxu0  ;;  %v371_v35 = vadd.f32 %v1134_v38, %v1117_v27 }
  0xf9   : > { %v1121_v29 = vpop.f32.mrb[11].mxu0  ;;  %v411_v46 = vmax.f32 %v379_v21, 0.0  ;;  %v382_v47 = vadd.f32 %v1119_v28, %v1134_v38 }
  0xfb   : > { %v728_v61 = vmul.f32 %v1139_v45, %v411_v46 }
  0xfe   : > { %v1123_v30 = vpop.f32.mrb[12].mxu0 }
  0xff   : > { %v1125_v31 = vpop.f32.mrb[13].mxu0 }
 0x100   : > { %v1127_v32 = vpop.f32.mrb[14].mxu0 }
 0x101   : > { %v1129_v33 = vpop.f32.mrb[15].mxu0 }
 0x15c   : > { %v978_v49 = vpop.f32.mrb[0].mxu1 }
 0x15d   : > { %v500_v50 = vadd.f32 %v978_v49, %v1134_v38  ;;  %v491_v51 = vpop.f32.mrb[1].mxu1 }
 0x15e   : > { %v492_v55 = vadd.f32 %v1134_v38, %v491_v51  ;;  %v979_v56 = vpop.f32.mrb[2].mxu1  ;;  %v409_v51 = vmax.f32 %v371_v35, 0.0  ;;  %v390_v35 = vadd.f32 %v1134_v38, %v1129_v33 }
 0x15f   : > { %v556_v58 = vmax.f32 %v500_v50, 0.0  ;;  %v503_v59 = vadd.f32 %v979_v56, %v1134_v38  ;;  %v494_v60 = vpop.f32.mrb[3].mxu1  ;;  %v723_v56 = vmul.f32 %v1139_v45, %v406_v42 }
 0x160   : > { %v554_v0 = vmax.f32 %v492_v55, 0.0  ;;  %v495_v1 = vadd.f32 %v1134_v38, %v494_v60 }
 0x161   : > { %v736_v2 = vmul.f32 %v1147_v54, %v556_v58  ;;  %v557_v3 = vmax.f32 %v503_v59, 0.0  ;;  %v374_v59 = vadd.f32 %v1134_v38, %v1121_v29 }
 0x162   : > { %v734_v5 = vmul.f32 %v1147_v54, %v554_v0  ;;  %v555_v6 = vmax.f32 %v495_v1, 0.0  ;;  %v395_v0 = vadd.f32 %v1123_v30, %v1134_v38 }
 0x163   : > { %v752_v9 = vadd.f32 %v736_v2, %v720_v53  ;;  %v737_v10 = vmul.f32 %v1147_v54, %v557_v3  ;;  %v726_v2 = vmul.f32 %v1139_v45, %v409_v51  ;;  %v412_v3 = vmax.f32 %v382_v47, 0.0 }
 0x164   : > { %v750_v13 = vadd.f32 %v734_v5, %v718_v62  ;;  %v735_v14 = vmul.f32 %v1147_v54, %v555_v6  ;;  %v982_v16 = vpop.f32.mrb[4].mxu1  ;;  %v410_v11 = vmax.f32 %v374_v59, 0.0  ;;  %v415_v15 = vmax.f32 %v395_v0, 0.0 }
 0x165   : > { %v753_v17 = vadd.f32 %v737_v10, %v721_v8  ;;  %v516_v19 = vadd.f32 %v982_v16, %v1134_v38  ;;  %v507_v20 = vpop.f32.mrb[5].mxu1 }
 0x166   : > { %v751_v22 = vadd.f32 %v735_v14, %v719_v12  ;;  %v508_v24 = vadd.f32 %v1134_v38, %v507_v20  ;;  %v983_v34 = vpop.f32.mrb[6].mxu1  ;;  %v729_v20 = vmul.f32 %v1139_v45, %v412_v3  ;;  %v727_v23 = vmul.f32 %v1139_v45, %v410_v11 }
 0x167   : > { %v767_v36 = vadd.f32 %v753_v17, %v752_v9  ;;  %v560_v37 = vmax.f32 %v516_v19, 0.0  ;;  %v519_v39 = vadd.f32 %v983_v34, %v1134_v38  ;;  %v510_v40 = vpop.f32.mrb[7].mxu1  ;;  %v387_v9 = vadd.f32 %v1134_v38, %v1125_v31 }
 0x168   : > { %v766_v41 = vadd.f32 %v751_v22, %v750_v13  ;;  %v558_v43 = vmax.f32 %v508_v24, 0.0  ;;  %v511_v26 = vadd.f32 %v1134_v38, %v510_v40  ;;  %v398_v19 = vadd.f32 %v1127_v32, %v1134_v38 }
 0x169   : > { %v740_v27 = vmul.f32 %v1147_v54, %v560_v37  ;;  %v561_v44 = vmax.f32 %v519_v39, 0.0  ;;  %v413_v22 = vmax.f32 %v387_v9, 0.0  ;;  %v732_v40 = vmul.f32 %v1139_v45, %v415_v15 }
 0x16a   : > { %v918_v48 = vpack.c.bf16 %v767_v36, %v766_v41  ;;  %v738_v49 = vmul.f32 %v1147_v54, %v558_v43  ;;  %v559_v50 = vmax.f32 %v511_v26, 0.0  ;;  %v416_v41 = vmax.f32 %v398_v19, 0.0 }
 0x16b   : > { %v756_v53 = vadd.f32 %v740_v27, %v724_v18  ;;  %v741_v55 = vmul.f32 %v1147_v54, %v561_v44  ;;  %v730_v27 = vmul.f32 %v1139_v45, %v413_v22 }
 0x16c   : > { %919 = vst [vmem:[%s1175_s28] sm:$0xff] %v918_v48   ;;  %v754_v57 = vadd.f32 %v738_v49, %v722_v25  ;;  %v739_v58 = vmul.f32 %v1147_v54, %v559_v50  ;;  %v986_v28 = vpop.f32.mrb[8].mxu1  ;;  %v414_v48 = vmax.f32 %v390_v35, 0.0 }
 0x16d   : > { %v757_v60 = vadd.f32 %v741_v55, %v725_v52  ;;  %v532_v62 = vadd.f32 %v986_v28, %v1134_v38  ;;  %v523_v63 = vpop.f32.mrb[9].mxu1 }
 0x16e   : > { %v755_v1 = vadd.f32 %v739_v58, %v723_v56  ;;  %v524_v4 = vadd.f32 %v1134_v38, %v523_v63  ;;  %v987_v5 = vpop.f32.mrb[10].mxu1  ;;  %v731_v28 = vmul.f32 %v1139_v45, %v414_v48 }
 0x16f   : > { %v769_v6 = vadd.f32 %v757_v60, %v756_v53  ;;  %v564_v7 = vmax.f32 %v532_v62, 0.0  ;;  %v535_v29 = vadd.f32 %v987_v5, %v1134_v38  ;;  %v526_v8 = vpop.f32.mrb[11].mxu1 }
 0x170   : > { %v768_v10 = vadd.f32 %v755_v1, %v754_v57  ;;  %v562_v12 = vmax.f32 %v524_v4, 0.0  ;;  %v527_v30 = vadd.f32 %v1134_v38, %v526_v8  ;;  %v733_v57 = vmul.f32 %v1139_v45, %v416_v41 }
 0x171   : > { %v744_v13 = vmul.f32 %v1147_v54, %v564_v7  ;;  %v565_v14 = vmax.f32 %v535_v29, 0.0 }
 0x172   : > { %v923_v16 = vpack.c.bf16 %v769_v6, %v768_v10  ;;  %v742_v17 = vmul.f32 %v1147_v54, %v562_v12  ;;  %v563_v18 = vmax.f32 %v527_v30, 0.0 }
 0x173   : > { %v760_v31 = vadd.f32 %v744_v13, %v728_v61  ;;  %v745_v21 = vmul.f32 %v1147_v54, %v565_v14 }
 0x174   : > { %935 = vst [vmem:[%s1175_s28 + $0x8] sm:$0xff] %v923_v16   ;;  %v758_v24 = vadd.f32 %v742_v17, %v726_v2  ;;  %v743_v34 = vmul.f32 %v1147_v54, %v563_v18  ;;  %v990_v36 = vpop.f32.mrb[12].mxu1 }
 0x175   : > { %v761_v25 = vadd.f32 %v745_v21, %v729_v20  ;;  %v548_v37 = vadd.f32 %v990_v36, %v1134_v38  ;;  %v539_v32 = vpop.f32.mrb[13].mxu1 }
 0x176   : > { %v759_v39 = vadd.f32 %v743_v34, %v727_v23  ;;  %v540_v42 = vadd.f32 %v1134_v38, %v539_v32  ;;  %v991_v43 = vpop.f32.mrb[14].mxu1 }
 0x177   : > { %v771_v26 = vadd.f32 %v761_v25, %v760_v31  ;;  %v568_v44 = vmax.f32 %v548_v37, 0.0  ;;  %v551_v46 = vadd.f32 %v991_v43, %v1134_v38  ;;  %v542_v33 = vpop.f32.mrb[15].mxu1 }
 0x178   : > { %v770_v47 = vadd.f32 %v759_v39, %v758_v24  ;;  %v566_v49 = vmax.f32 %v540_v42, 0.0  ;;  %v543_v50 = vadd.f32 %v1134_v38, %v542_v33 }
 0x179   : > { %v748_v51 = vmul.f32 %v1147_v54, %v568_v44  ;;  %v569_v52 = vmax.f32 %v551_v46, 0.0 }
 0x17a   : > { %v928_v53 = vpack.c.bf16 %v771_v26, %v770_v47  ;;  %v746_v55 = vmul.f32 %v1147_v54, %v566_v49  ;;  %v567_v56 = vmax.f32 %v543_v50, 0.0 }
 0x17b   : > { %v764_v58 = vadd.f32 %v748_v51, %v732_v40  ;;  %v749_v59 = vmul.f32 %v1147_v54, %v569_v52 }
 0x17c   : > { %936 = vst [vmem:[%s1175_s28 + $0x10] sm:$0xff] %v928_v53   ;;  %v762_v60 = vadd.f32 %v746_v55, %v730_v27  ;;  %v747_v61 = vmul.f32 %v1147_v54, %v567_v56 }
 0x17d   : > { %v765_v38 = vadd.f32 %v749_v59, %v733_v57 }
 0x17e   : > { %v763_v62 = vadd.f32 %v747_v61, %v731_v28 }
 0x17f   : > { %v773_v63 = vadd.f32 %v765_v38, %v764_v58 }
 0x180   : > { %v772_v0 = vadd.f32 %v763_v62, %v762_v60 }
 0x182   : > { %v933_v1 = vpack.c.bf16 %v773_v63, %v772_v0 }
 0x184   : > { %937 = vst [vmem:[%s1175_s28 + $0x18] sm:$0xff] %v933_v1  }
 0x185 PF: > { %s13_s14 = sadd.s32 1, %s1050_s14   ;;  %s1236_s12 = smov %s1046_s13 }
 0x186   : > { %p10_p5 = scmp.ge.s32.totalorder %s13_s14, 4   ;;  %s1237_s13 = smov %s1239_s15 }
 0x188   :  { %12 = sbr.rel (!%p10_p5) target bundleno = 2 (0x2), region = 62 }

</bundles_post_ra>
